<compile_context>
chip_gen: v7x
topology: tpu7x:2x2x1
jax: 0.10.0
libtpu: 0.0.40
codegen_flags: <defaults>
</compile_context>

<pallas_src>
import functools

import jax
import jax.numpy as jnp
from jax.experimental import pallas as pl
from jax.experimental.pallas import tpu as pltpu


# ----------------------------------------------------------------------------
# Fused Pallas kernel: all three agent groups, fc1 + ReLU + GRUCell + fc2.
# ----------------------------------------------------------------------------
def _shared_but_sides_kernel(x_ref, h_ref,
                             w1_ref, b1_ref,
                             wg_ref, bg_ref,
                             w2_ref, b2_ref,
                             out_ref,
                             *, row_segments, hidden_dim, h_col0,
                             exact_h_via_matmul):
    """Rows of x/h are group-major: [side-0 rows | shared rows | side-1 rows].

    Per group the six GRU gate matmuls are fused into one matmul on the
    block-structured weight
        [[W_ir W_iz W_in  0  ],
         [W_hr W_hz  0   W_hn]]          # [2H, 4H]
    with lhs = [xh | h] and biases pre-folded into [b_ir+b_hr, b_iz+b_hz,
    b_in, b_hn]  # [1, 4H].

    fc2 weights are augmented as [W2 | 0 | I_H] so one matmul produces the
    combined lane-dense output slab [q | pad | h_new].
    """
    H = hidden_dim
    for g, (r0, n_rows) in enumerate(row_segments):   # static, unrolled
        rows = pl.ds(r0, n_rows)
        x = x_ref[rows, :]
        h_in = h_ref[rows, :]
        h32 = h_in.astype(jnp.float32)

        # fc1 + ReLU (f32 accumulate on the MXU)
        xh = jnp.dot(x, w1_ref[g], preferred_element_type=jnp.float32)
        xh = jnp.maximum(xh + b1_ref[g], 0.0)

        # Single fused GRU gate matmul: [rows, 2H] @ [2H, 4H] -> [rows, 4H]
        lhs = jnp.concatenate([xh.astype(x.dtype), h_in], axis=-1)
        gates = jnp.dot(lhs, wg_ref[g],
                        preferred_element_type=jnp.float32) + bg_ref[g]

        r = jax.nn.sigmoid(gates[:, 0:H])
        z = jax.nn.sigmoid(gates[:, H:2 * H])
        n = jnp.tanh(gates[:, 2 * H:3 * H] + r * gates[:, 3 * H:4 * H])
        h_new = (1.0 - z) * n + z * h32

        # fc2 (augmented with identity block) — one lane-dense [rows, W] slab
        # holding [q | pad | h_new]; single unmasked full-lane store.
        q_comb = jnp.dot(h_new.astype(x.dtype), w2_ref[g],
                         preferred_element_type=jnp.float32) + b2_ref[g]
        out_ref[rows, :] = q_comb
        if not exact_h_via_matmul:
            # bf16 matmul operands would round h'; overwrite with exact f32.
            out_ref[rows, h_col0:] = h_new


# ----------------------------------------------------------------------------
# Parameter construction + packing.
# ----------------------------------------------------------------------------
def _uniform(key, shape, bound):
    return jax.random.uniform(key, shape, jnp.float32, -bound, bound)


def init_rnn_agent_params(key, input_shape, hidden_dim, n_actions):
    """RNNAgent params stored as [in, out] so the kernel computes x @ W.

    NOTE: a real PyTorch GRUCell checkpoint stores weight_ih / weight_hh packed
    as [3H, in] in (r, z, n) order and expects x @ W.T; transpose and split into
    the six [in, out] matrices below in that order when importing weights.
    """
    ks = jax.random.split(key, 16)
    b_fc1 = float(1.0 / (input_shape ** 0.5))
    b_gru = float(1.0 / (hidden_dim ** 0.5))
    b_fc2 = float(1.0 / (hidden_dim ** 0.5))
    return {
        "w1": _uniform(ks[0], (input_shape, hidden_dim), b_fc1),
        "b1": _uniform(ks[1], (1, hidden_dim), b_fc1),
        "w_ir": _uniform(ks[2], (hidden_dim, hidden_dim), b_gru),
        "w_iz": _uniform(ks[3], (hidden_dim, hidden_dim), b_gru),
        "w_in": _uniform(ks[4], (hidden_dim, hidden_dim), b_gru),
        "w_hr": _uniform(ks[5], (hidden_dim, hidden_dim), b_gru),
        "w_hz": _uniform(ks[6], (hidden_dim, hidden_dim), b_gru),
        "w_hn": _uniform(ks[7], (hidden_dim, hidden_dim), b_gru),
        "b_ir": _uniform(ks[8], (1, hidden_dim), b_gru),
        "b_iz": _uniform(ks[9], (1, hidden_dim), b_gru),
        "b_in": _uniform(ks[10], (1, hidden_dim), b_gru),
        "b_hr": _uniform(ks[11], (1, hidden_dim), b_gru),
        "b_hz": _uniform(ks[12], (1, hidden_dim), b_gru),
        "b_hn": _uniform(ks[13], (1, hidden_dim), b_gru),
        "w2": _uniform(ks[14], (hidden_dim, n_actions), b_fc2),
        "b2": _uniform(ks[15], (1, n_actions), b_fc2),
    }


def _pack_group_params(p, full_input_shape, hidden_dim, n_actions, out_width):
    """Pack one agent's params into the fused-kernel layout."""
    H = hidden_dim
    w1 = p["w1"]
    d_in = w1.shape[0]
    if d_in < full_input_shape:
        # Side agents drop the trailing one-hot agent-id columns; zero-padding
        # the corresponding fc1 rows lets them consume the full-width input.
        w1 = jnp.concatenate(
            [w1, jnp.zeros((full_input_shape - d_in, H), w1.dtype)], axis=0)
    zeros_hh = jnp.zeros((H, H), jnp.float32)
    wg = jnp.concatenate([
        jnp.concatenate([p["w_ir"], p["w_iz"], p["w_in"], zeros_hh], axis=1),
        jnp.concatenate([p["w_hr"], p["w_hz"], zeros_hh, p["w_hn"]], axis=1),
    ], axis=0)                                                   # [2H, 4H]
    bg = jnp.concatenate([p["b_ir"] + p["b_hr"],
                          p["b_iz"] + p["b_hz"],
                          p["b_in"], p["b_hn"]], axis=1)         # [1, 4H]
    # fc2 augmented with identity block: [W2 | 0 | I_H]  -> [H, out_width]
    pad_cols = out_width - n_actions - H
    w2 = jnp.concatenate(
        [p["w2"], jnp.zeros((H, pad_cols), jnp.float32), jnp.eye(H, dtype=jnp.float32)],
        axis=1)
    b2 = jnp.concatenate(
        [p["b2"], jnp.zeros((1, out_width - n_actions), jnp.float32)], axis=1)
    return w1, p["b1"], wg, bg, w2, b2


# ----------------------------------------------------------------------------
# Module wrapper.
# ----------------------------------------------------------------------------
class SharedButSidesAgentPallas:
    """JAX/Pallas port of SharedButSidesAgent with RNNAgent sub-agents."""

    def __init__(self, key, input_shape, n_agents, hidden_dim, n_actions,
                 add_agent_id=True, matmul_dtype=jnp.float32):
        assert n_agents >= 3, "SharedButSidesAgent needs >= 3 agents"
        self.input_shape = input_shape
        self.n_agents = n_agents
        self.hidden_dim = hidden_dim
        self.n_actions = n_actions
        self.add_agent_id = add_agent_id
        # Combined [q | pad | h'] output slab padded to a multiple of 128
        # lanes -> single unmasked full-lane store in the kernel.
        self.out_width = ((n_actions + hidden_dim + 127) // 128) * 128
        self.h_col0 = self.out_width - hidden_dim
        # Matmul operand dtype; use jnp.bfloat16 on v6e/v7x to halve HBM bytes
        # (f32 accumulation + f32 elementwise are kept inside the kernel).
        self.matmul_dtype = jnp.dtype(matmul_dtype)

        side_shape = input_shape - n_agents if add_agent_id else input_shape
        self.side_shape = side_shape
        k0, k1, k2 = jax.random.split(key, 3)
        # agents[0]/agents[2]: side agents (reduced input); agents[1]: shared.
        self.params = [
            init_rnn_agent_params(k0, side_shape, hidden_dim, n_actions),
            init_rnn_agent_params(k1, input_shape, hidden_dim, n_actions),
            init_rnn_agent_params(k2, side_shape, hidden_dim, n_actions),
        ]
        packed = [_pack_group_params(p, input_shape, hidden_dim, n_actions,
                                     self.out_width) for p in self.params]
        self.w1 = jnp.stack([g[0] for g in packed]).astype(self.matmul_dtype)
        self.b1 = jnp.stack([g[1] for g in packed])              # [3, 1, H]
        self.wg = jnp.stack([g[2] for g in packed]).astype(self.matmul_dtype)
        self.bg = jnp.stack([g[3] for g in packed])              # [3, 1, 4H]
        self.w2 = jnp.stack([g[4] for g in packed]).astype(self.matmul_dtype)
        self.b2 = jnp.stack([g[5] for g in packed])              # [3, 1, W]
        self._fwd_cache = {}

    def init_hidden(self):
        # side_1 (1) + shared expanded (n_agents-2) + side_2 (1), all zeros
        return jnp.zeros((self.n_agents, self.hidden_dim), jnp.float32)

    def _get_forward(self, batch):
        fn = self._fwd_cache.get(batch)
        if fn is not None:
            return fn
        A, H, D = self.n_agents, self.hidden_dim, self.input_shape
        out_w, n_actions, h_col0 = self.out_width, self.n_actions, self.h_col0
        mm_dtype = self.matmul_dtype
        n_rows = A * batch
        # Group-major contiguous row segments:
        #   [agent 0 | agents 1..A-2 (shared) | agent A-1]
        row_segments = ((0, batch),
                        (batch, (A - 2) * batch),
                        ((A - 1) * batch, batch))
        exact_h = (mm_dtype == jnp.dtype(jnp.float32))
        kernel = functools.partial(_shared_but_sides_kernel,
                                   row_segments=row_segments, hidden_dim=H,
                                   h_col0=h_col0,
                                   exact_h_via_matmul=exact_h)
        vmem = pl.BlockSpec(memory_space=pltpu.MemorySpace.VMEM)
        call = pl.pallas_call(
            kernel,
            out_shape=jax.ShapeDtypeStruct((n_rows, out_w), jnp.float32),
            in_specs=[vmem] * 8,
            out_specs=vmem,
        )

        def fwd(inputs, hidden, w1, b1, wg, bg, w2, b2):
            # [B, A, F] -> group-major 2-D rows [A*B, F] (row = a*B + b)
            x_gm = jnp.transpose(inputs, (1, 0, 2)).reshape(n_rows, D)
            h_gm = jnp.transpose(hidden, (1, 0, 2)).reshape(n_rows, H)
            out_gm = call(x_gm.astype(mm_dtype), h_gm.astype(mm_dtype),
                          w1, b1, wg, bg, w2, b2)
            out = jnp.transpose(out_gm.reshape(A, batch, out_w), (1, 0, 2))
            q = out[:, :, :n_actions]
            h_new = out[:, :, h_col0:]
            return q, h_new

        fn = jax.jit(fwd)
        self._fwd_cache[batch] = fn
        return fn

    def forward(self, inputs, hidden_states):
        # inputs: [B, n_agents, input_shape], hidden_states: [B, n_agents, H]
        b, a, d = inputs.shape
        assert a == self.n_agents and d == self.input_shape
        fwd = self._get_forward(b)
        return fwd(inputs, hidden_states, self.w1, self.b1, self.wg, self.bg,
                   self.w2, self.b2)


# ----------------------------------------------------------------------------
# Pure-JAX reference for correctness checking.
# ----------------------------------------------------------------------------
def _ref_agent(params, x, h):
    xh = jnp.maximum(x @ params["w1"] + params["b1"], 0.0)
    r = jax.nn.sigmoid(xh @ params["w_ir"] + params["b_ir"]
                       + h @ params["w_hr"] + params["b_hr"])
    z = jax.nn.sigmoid(xh @ params["w_iz"] + params["b_iz"]
                       + h @ params["w_hz"] + params["b_hz"])
    n = jnp.tanh(xh @ params["w_in"] + params["b_in"]
                 + r * (h @ params["w_hn"] + params["b_hn"]))
    h_new = (1.0 - z) * n + z * h
    q = h_new @ params["w2"] + params["b2"]
    return q, h_new


if __name__ == "__main__":
    B, N_AGENTS, INPUT_SHAPE, HIDDEN, N_ACTIONS = 2, 4, 16, 32, 8

    key = jax.random.PRNGKey(0)
    k_params, k_x, k_h = jax.random.split(key, 3)

    model = SharedButSidesAgentPallas(
        k_params, INPUT_SHAPE, N_AGENTS, HIDDEN, N_ACTIONS, add_agent_id=True)

    inputs = jax.random.normal(k_x, (B, N_AGENTS, INPUT_SHAPE), jnp.float32)
    hidden = jax.random.normal(k_h, (B, N_AGENTS, HIDDEN), jnp.float32)

    outs, hiddens = model.forward(inputs, hidden)
    outs, hiddens = jax.block_until_ready((outs, hiddens))

    assert outs.shape == (B, N_AGENTS, N_ACTIONS), outs.shape
    assert hiddens.shape == (B, N_AGENTS, HIDDEN), hiddens.shape

    # reference check (same slicing / routing as the PyTorch module, pure JAX)
    def ref_forward(inputs, hidden):
        side1_x = inputs[:, 0, :-N_AGENTS]
        shared_x = inputs[:, 1:-1].reshape(B * (N_AGENTS - 2), -1)
        side2_x = inputs[:, -1, :-N_AGENTS]
        q1, h1 = _ref_agent(model.params[0], side1_x, hidden[:, 0])
        qs, hs = _ref_agent(model.params[1], shared_x,
                            hidden[:, 1:-1].reshape(B * (N_AGENTS - 2), -1))
        q2, h2 = _ref_agent(model.params[2], side2_x, hidden[:, -1])
        q = jnp.concatenate([q1[:, None],
                             qs.reshape(B, N_AGENTS - 2, -1),
                             q2[:, None]], axis=1)
        h = jnp.concatenate([h1[:, None],
                             hs.reshape(B, N_AGENTS - 2, -1),
                             h2[:, None]], axis=1)
        return q, h

    q_ref, h_ref = ref_forward(inputs, hidden)
    assert jnp.allclose(outs, q_ref, atol=1e-4, rtol=1e-4), \
        float(jnp.max(jnp.abs(outs - q_ref)))
    assert jnp.allclose(hiddens, h_ref, atol=1e-4, rtol=1e-4), \
        float(jnp.max(jnp.abs(hiddens - h_ref)))

    print("KERNEL_OK")
</pallas_src>

<mosaic_0001>
module attributes {stable_mosaic.version = 11 : i64} {
  func.func @_shared_but_sides_kernel(%arg0: memref<8x16xf32, #tpu.memory_space<vmem>>, %arg1: memref<8x32xf32, #tpu.memory_space<vmem>>, %arg2: memref<3x16x32xf32, #tpu.memory_space<vmem>>, %arg3: memref<3x1x32xf32, #tpu.memory_space<vmem>>, %arg4: memref<3x64x128xf32, #tpu.memory_space<vmem>>, %arg5: memref<3x1x128xf32, #tpu.memory_space<vmem>>, %arg6: memref<3x32x128xf32, #tpu.memory_space<vmem>>, %arg7: memref<3x1x128xf32, #tpu.memory_space<vmem>>, %arg8: memref<8x128xf32, #tpu.memory_space<vmem>>) attributes {dimension_semantics = [], scalar_prefetch = 0 : i64, scratch_operands = 0 : i64, tpu.core_type = #tpu.core_type<tc>} {
    %c0 = arith.constant 0 : index
    %c0_0 = arith.constant 0 : index
    %0 = vector.load %arg0[%c0, %c0_0] : memref<8x16xf32, #tpu.memory_space<vmem>>, vector<2x16xf32>
    %c0_1 = arith.constant 0 : index
    %c0_2 = arith.constant 0 : index
    %1 = vector.load %arg1[%c0_1, %c0_2] : memref<8x32xf32, #tpu.memory_space<vmem>>, vector<2x32xf32>
    %c0_3 = arith.constant 0 : index
    %c0_4 = arith.constant 0 : index
    %c0_5 = arith.constant 0 : index
    %2 = vector.load %arg2[%c0_3, %c0_4, %c0_5] : memref<3x16x32xf32, #tpu.memory_space<vmem>>, vector<1x16x32xf32>
    %3 = vector.shape_cast %2 : vector<1x16x32xf32> to vector<16x32xf32>
    %cst = arith.constant dense<0.000000e+00> : vector<2x32xf32>
    %4 = tpu.matmul %0, %3, %cst {dimension_numbers = #tpu.dot_dimension_numbers<[1], [0], [0], [1], [0, 0, 1, 1], [], []>} : vector<2x16xf32>, vector<16x32xf32>, vector<2x32xf32> -> vector<2x32xf32>
    %c0_6 = arith.constant 0 : index
    %c0_7 = arith.constant 0 : index
    %c0_8 = arith.constant 0 : index
    %5 = vector.load %arg3[%c0_6, %c0_7, %c0_8] : memref<3x1x32xf32, #tpu.memory_space<vmem>>, vector<1x1x32xf32>
    %6 = vector.shape_cast %5 : vector<1x1x32xf32> to vector<1x32xf32>
    %7 = vector.broadcast %6 : vector<1x32xf32> to vector<2x32xf32>
    %8 = arith.addf %4, %7 : vector<2x32xf32>
    %cst_9 = arith.constant 0.000000e+00 : f32
    %9 = vector.broadcast %cst_9 : f32 to vector<2x32xf32>
    %10 = arith.maximumf %8, %9 : vector<2x32xf32>
    %11 = tpu.concatenate %10, %1 in 1 : vector<2x32xf32>, vector<2x32xf32> -> vector<2x64xf32>
    %c0_10 = arith.constant 0 : index
    %c0_11 = arith.constant 0 : index
    %c0_12 = arith.constant 0 : index
    %12 = vector.load %arg4[%c0_10, %c0_11, %c0_12] : memref<3x64x128xf32, #tpu.memory_space<vmem>>, vector<1x64x128xf32>
    %13 = vector.shape_cast %12 : vector<1x64x128xf32> to vector<64x128xf32>
    %cst_13 = arith.constant dense<0.000000e+00> : vector<2x128xf32>
    %14 = tpu.matmul %11, %13, %cst_13 {dimension_numbers = #tpu.dot_dimension_numbers<[1], [0], [0], [1], [0, 0, 1, 1], [], []>} : vector<2x64xf32>, vector<64x128xf32>, vector<2x128xf32> -> vector<2x128xf32>
    %c0_14 = arith.constant 0 : index
    %c0_15 = arith.constant 0 : index
    %c0_16 = arith.constant 0 : index
    %15 = vector.load %arg5[%c0_14, %c0_15, %c0_16] : memref<3x1x128xf32, #tpu.memory_space<vmem>>, vector<1x1x128xf32>
    %16 = vector.shape_cast %15 : vector<1x1x128xf32> to vector<1x128xf32>
    %17 = vector.broadcast %16 : vector<1x128xf32> to vector<2x128xf32>
    %18 = arith.addf %14, %17 : vector<2x128xf32>
    %19 = vector.extract_strided_slice %18 {offsets = [0, 0], sizes = [2, 32], strides = [1, 1]} : vector<2x128xf32> to vector<2x32xf32>
    %20 = arith.negf %19 : vector<2x32xf32>
    %21 = math.exp %20 : vector<2x32xf32>
    %cst_17 = arith.constant 1.000000e+00 : f32
    %22 = vector.broadcast %cst_17 : f32 to vector<2x32xf32>
    %23 = arith.addf %22, %21 : vector<2x32xf32>
    %24 = arith.divf %22, %23 : vector<2x32xf32>
    %25 = vector.extract_strided_slice %18 {offsets = [0, 32], sizes = [2, 32], strides = [1, 1]} : vector<2x128xf32> to vector<2x32xf32>
    %26 = arith.negf %25 : vector<2x32xf32>
    %27 = math.exp %26 : vector<2x32xf32>
    %cst_18 = arith.constant 1.000000e+00 : f32
    %28 = vector.broadcast %cst_18 : f32 to vector<2x32xf32>
    %29 = arith.addf %28, %27 : vector<2x32xf32>
    %30 = arith.divf %28, %29 : vector<2x32xf32>
    %31 = vector.extract_strided_slice %18 {offsets = [0, 64], sizes = [2, 32], strides = [1, 1]} : vector<2x128xf32> to vector<2x32xf32>
    %32 = vector.extract_strided_slice %18 {offsets = [0, 96], sizes = [2, 32], strides = [1, 1]} : vector<2x128xf32> to vector<2x32xf32>
    %33 = arith.mulf %24, %32 : vector<2x32xf32>
    %34 = arith.addf %31, %33 : vector<2x32xf32>
    %35 = math.tanh %34 : vector<2x32xf32>
    %cst_19 = arith.constant 1.000000e+00 : f32
    %36 = vector.broadcast %cst_19 : f32 to vector<2x32xf32>
    %37 = arith.subf %36, %30 : vector<2x32xf32>
    %38 = arith.mulf %37, %35 : vector<2x32xf32>
    %39 = arith.mulf %30, %1 : vector<2x32xf32>
    %40 = arith.addf %38, %39 : vector<2x32xf32>
    %c0_20 = arith.constant 0 : index
    %c0_21 = arith.constant 0 : index
    %c0_22 = arith.constant 0 : index
    %41 = vector.load %arg6[%c0_20, %c0_21, %c0_22] : memref<3x32x128xf32, #tpu.memory_space<vmem>>, vector<1x32x128xf32>
    %42 = vector.shape_cast %41 : vector<1x32x128xf32> to vector<32x128xf32>
    %cst_23 = arith.constant dense<0.000000e+00> : vector<2x128xf32>
    %43 = tpu.matmul %40, %42, %cst_23 {dimension_numbers = #tpu.dot_dimension_numbers<[1], [0], [0], [1], [0, 0, 1, 1], [], []>} : vector<2x32xf32>, vector<32x128xf32>, vector<2x128xf32> -> vector<2x128xf32>
    %c0_24 = arith.constant 0 : index
    %c0_25 = arith.constant 0 : index
    %c0_26 = arith.constant 0 : index
    %44 = vector.load %arg7[%c0_24, %c0_25, %c0_26] : memref<3x1x128xf32, #tpu.memory_space<vmem>>, vector<1x1x128xf32>
    %45 = vector.shape_cast %44 : vector<1x1x128xf32> to vector<1x128xf32>
    %46 = vector.broadcast %45 : vector<1x128xf32> to vector<2x128xf32>
    %47 = arith.addf %43, %46 : vector<2x128xf32>
    %c0_27 = arith.constant 0 : index
    %c0_28 = arith.constant 0 : index
    %48 = vector.load %arg8[%c0_27, %c0_28] : memref<8x128xf32, #tpu.memory_space<vmem>>, vector<2x128xf32>
    tpu.vector_store %arg8[%c0_27, %c0_28], %47 {strides = array<i32>} : memref<8x128xf32, #tpu.memory_space<vmem>>, vector<2x128xf32>,
    %c2 = arith.constant 2 : index
    %c0_29 = arith.constant 0 : index
    %49 = vector.load %arg0[%c2, %c0_29] : memref<8x16xf32, #tpu.memory_space<vmem>>, vector<4x16xf32>
    %c2_30 = arith.constant 2 : index
    %c0_31 = arith.constant 0 : index
    %50 = vector.load %arg1[%c2_30, %c0_31] : memref<8x32xf32, #tpu.memory_space<vmem>>, vector<4x32xf32>
    %c1 = arith.constant 1 : index
    %c0_32 = arith.constant 0 : index
    %c0_33 = arith.constant 0 : index
    %51 = vector.load %arg2[%c1, %c0_32, %c0_33] : memref<3x16x32xf32, #tpu.memory_space<vmem>>, vector<1x16x32xf32>
    %52 = vector.shape_cast %51 : vector<1x16x32xf32> to vector<16x32xf32>
    %cst_34 = arith.constant dense<0.000000e+00> : vector<4x32xf32>
    %53 = tpu.matmul %49, %52, %cst_34 {dimension_numbers = #tpu.dot_dimension_numbers<[1], [0], [0], [1], [0, 0, 1, 1], [], []>} : vector<4x16xf32>, vector<16x32xf32>, vector<4x32xf32> -> vector<4x32xf32>
    %c1_35 = arith.constant 1 : index
    %c0_36 = arith.constant 0 : index
    %c0_37 = arith.constant 0 : index
    %54 = vector.load %arg3[%c1_35, %c0_36, %c0_37] : memref<3x1x32xf32, #tpu.memory_space<vmem>>, vector<1x1x32xf32>
    %55 = vector.shape_cast %54 : vector<1x1x32xf32> to vector<1x32xf32>
    %56 = vector.broadcast %55 : vector<1x32xf32> to vector<4x32xf32>
    %57 = arith.addf %53, %56 : vector<4x32xf32>
    %cst_38 = arith.constant 0.000000e+00 : f32
    %58 = vector.broadcast %cst_38 : f32 to vector<4x32xf32>
    %59 = arith.maximumf %57, %58 : vector<4x32xf32>
    %60 = tpu.concatenate %59, %50 in 1 : vector<4x32xf32>, vector<4x32xf32> -> vector<4x64xf32>
    %c1_39 = arith.constant 1 : index
    %c0_40 = arith.constant 0 : index
    %c0_41 = arith.constant 0 : index
    %61 = vector.load %arg4[%c1_39, %c0_40, %c0_41] : memref<3x64x128xf32, #tpu.memory_space<vmem>>, vector<1x64x128xf32>
    %62 = vector.shape_cast %61 : vector<1x64x128xf32> to vector<64x128xf32>
    %cst_42 = arith.constant dense<0.000000e+00> : vector<4x128xf32>
    %63 = tpu.matmul %60, %62, %cst_42 {dimension_numbers = #tpu.dot_dimension_numbers<[1], [0], [0], [1], [0, 0, 1, 1], [], []>} : vector<4x64xf32>, vector<64x128xf32>, vector<4x128xf32> -> vector<4x128xf32>
    %c1_43 = arith.constant 1 : index
    %c0_44 = arith.constant 0 : index
    %c0_45 = arith.constant 0 : index
    %64 = vector.load %arg5[%c1_43, %c0_44, %c0_45] : memref<3x1x128xf32, #tpu.memory_space<vmem>>, vector<1x1x128xf32>
    %65 = vector.shape_cast %64 : vector<1x1x128xf32> to vector<1x128xf32>
    %66 = vector.broadcast %65 : vector<1x128xf32> to vector<4x128xf32>
    %67 = arith.addf %63, %66 : vector<4x128xf32>
    %68 = vector.extract_strided_slice %67 {offsets = [0, 0], sizes = [4, 32], strides = [1, 1]} : vector<4x128xf32> to vector<4x32xf32>
    %69 = arith.negf %68 : vector<4x32xf32>
    %70 = math.exp %69 : vector<4x32xf32>
    %cst_46 = arith.constant 1.000000e+00 : f32
    %71 = vector.broadcast %cst_46 : f32 to vector<4x32xf32>
    %72 = arith.addf %71, %70 : vector<4x32xf32>
    %73 = arith.divf %71, %72 : vector<4x32xf32>
    %74 = vector.extract_strided_slice %67 {offsets = [0, 32], sizes = [4, 32], strides = [1, 1]} : vector<4x128xf32> to vector<4x32xf32>
    %75 = arith.negf %74 : vector<4x32xf32>
    %76 = math.exp %75 : vector<4x32xf32>
    %cst_47 = arith.constant 1.000000e+00 : f32
    %77 = vector.broadcast %cst_47 : f32 to vector<4x32xf32>
    %78 = arith.addf %77, %76 : vector<4x32xf32>
    %79 = arith.divf %77, %78 : vector<4x32xf32>
    %80 = vector.extract_strided_slice %67 {offsets = [0, 64], sizes = [4, 32], strides = [1, 1]} : vector<4x128xf32> to vector<4x32xf32>
    %81 = vector.extract_strided_slice %67 {offsets = [0, 96], sizes = [4, 32], strides = [1, 1]} : vector<4x128xf32> to vector<4x32xf32>
    %82 = arith.mulf %73, %81 : vector<4x32xf32>
    %83 = arith.addf %80, %82 : vector<4x32xf32>
    %84 = math.tanh %83 : vector<4x32xf32>
    %cst_48 = arith.constant 1.000000e+00 : f32
    %85 = vector.broadcast %cst_48 : f32 to vector<4x32xf32>
    %86 = arith.subf %85, %79 : vector<4x32xf32>
    %87 = arith.mulf %86, %84 : vector<4x32xf32>
    %88 = arith.mulf %79, %50 : vector<4x32xf32>
    %89 = arith.addf %87, %88 : vector<4x32xf32>
    %c1_49 = arith.constant 1 : index
    %c0_50 = arith.constant 0 : index
    %c0_51 = arith.constant 0 : index
    %90 = vector.load %arg6[%c1_49, %c0_50, %c0_51] : memref<3x32x128xf32, #tpu.memory_space<vmem>>, vector<1x32x128xf32>
    %91 = vector.shape_cast %90 : vector<1x32x128xf32> to vector<32x128xf32>
    %cst_52 = arith.constant dense<0.000000e+00> : vector<4x128xf32>
    %92 = tpu.matmul %89, %91, %cst_52 {dimension_numbers = #tpu.dot_dimension_numbers<[1], [0], [0], [1], [0, 0, 1, 1], [], []>} : vector<4x32xf32>, vector<32x128xf32>, vector<4x128xf32> -> vector<4x128xf32>
    %c1_53 = arith.constant 1 : index
    %c0_54 = arith.constant 0 : index
    %c0_55 = arith.constant 0 : index
    %93 = vector.load %arg7[%c1_53, %c0_54, %c0_55] : memref<3x1x128xf32, #tpu.memory_space<vmem>>, vector<1x1x128xf32>
    %94 = vector.shape_cast %93 : vector<1x1x128xf32> to vector<1x128xf32>
    %95 = vector.broadcast %94 : vector<1x128xf32> to vector<4x128xf32>
    %96 = arith.addf %92, %95 : vector<4x128xf32>
    %c2_56 = arith.constant 2 : index
    %c0_57 = arith.constant 0 : index
    %97 = vector.load %arg8[%c2_56, %c0_57] : memref<8x128xf32, #tpu.memory_space<vmem>>, vector<4x128xf32>
    tpu.vector_store %arg8[%c2_56, %c0_57], %96 {strides = array<i32>} : memref<8x128xf32, #tpu.memory_space<vmem>>, vector<4x128xf32>,
    %c6 = arith.constant 6 : index
    %c0_58 = arith.constant 0 : index
    %98 = vector.load %arg0[%c6, %c0_58] : memref<8x16xf32, #tpu.memory_space<vmem>>, vector<2x16xf32>
    %c6_59 = arith.constant 6 : index
    %c0_60 = arith.constant 0 : index
    %99 = vector.load %arg1[%c6_59, %c0_60] : memref<8x32xf32, #tpu.memory_space<vmem>>, vector<2x32xf32>
    %c2_61 = arith.constant 2 : index
    %c0_62 = arith.constant 0 : index
    %c0_63 = arith.constant 0 : index
    %100 = vector.load %arg2[%c2_61, %c0_62, %c0_63] : memref<3x16x32xf32, #tpu.memory_space<vmem>>, vector<1x16x32xf32>
    %101 = vector.shape_cast %100 : vector<1x16x32xf32> to vector<16x32xf32>
    %cst_64 = arith.constant dense<0.000000e+00> : vector<2x32xf32>
    %102 = tpu.matmul %98, %101, %cst_64 {dimension_numbers = #tpu.dot_dimension_numbers<[1], [0], [0], [1], [0, 0, 1, 1], [], []>} : vector<2x16xf32>, vector<16x32xf32>, vector<2x32xf32> -> vector<2x32xf32>
    %c2_65 = arith.constant 2 : index
    %c0_66 = arith.constant 0 : index
    %c0_67 = arith.constant 0 : index
    %103 = vector.load %arg3[%c2_65, %c0_66, %c0_67] : memref<3x1x32xf32, #tpu.memory_space<vmem>>, vector<1x1x32xf32>
    %104 = vector.shape_cast %103 : vector<1x1x32xf32> to vector<1x32xf32>
    %105 = vector.broadcast %104 : vector<1x32xf32> to vector<2x32xf32>
    %106 = arith.addf %102, %105 : vector<2x32xf32>
    %cst_68 = arith.constant 0.000000e+00 : f32
    %107 = vector.broadcast %cst_68 : f32 to vector<2x32xf32>
    %108 = arith.maximumf %106, %107 : vector<2x32xf32>
    %109 = tpu.concatenate %108, %99 in 1 : vector<2x32xf32>, vector<2x32xf32> -> vector<2x64xf32>
    %c2_69 = arith.constant 2 : index
    %c0_70 = arith.constant 0 : index
    %c0_71 = arith.constant 0 : index
    %110 = vector.load %arg4[%c2_69, %c0_70, %c0_71] : memref<3x64x128xf32, #tpu.memory_space<vmem>>, vector<1x64x128xf32>
    %111 = vector.shape_cast %110 : vector<1x64x128xf32> to vector<64x128xf32>
    %cst_72 = arith.constant dense<0.000000e+00> : vector<2x128xf32>
    %112 = tpu.matmul %109, %111, %cst_72 {dimension_numbers = #tpu.dot_dimension_numbers<[1], [0], [0], [1], [0, 0, 1, 1], [], []>} : vector<2x64xf32>, vector<64x128xf32>, vector<2x128xf32> -> vector<2x128xf32>
    %c2_73 = arith.constant 2 : index
    %c0_74 = arith.constant 0 : index
    %c0_75 = arith.constant 0 : index
    %113 = vector.load %arg5[%c2_73, %c0_74, %c0_75] : memref<3x1x128xf32, #tpu.memory_space<vmem>>, vector<1x1x128xf32>
    %114 = vector.shape_cast %113 : vector<1x1x128xf32> to vector<1x128xf32>
    %115 = vector.broadcast %114 : vector<1x128xf32> to vector<2x128xf32>
    %116 = arith.addf %112, %115 : vector<2x128xf32>
    %117 = vector.extract_strided_slice %116 {offsets = [0, 0], sizes = [2, 32], strides = [1, 1]} : vector<2x128xf32> to vector<2x32xf32>
    %118 = arith.negf %117 : vector<2x32xf32>
    %119 = math.exp %118 : vector<2x32xf32>
    %cst_76 = arith.constant 1.000000e+00 : f32
    %120 = vector.broadcast %cst_76 : f32 to vector<2x32xf32>
    %121 = arith.addf %120, %119 : vector<2x32xf32>
    %122 = arith.divf %120, %121 : vector<2x32xf32>
    %123 = vector.extract_strided_slice %116 {offsets = [0, 32], sizes = [2, 32], strides = [1, 1]} : vector<2x128xf32> to vector<2x32xf32>
    %124 = arith.negf %123 : vector<2x32xf32>
    %125 = math.exp %124 : vector<2x32xf32>
    %cst_77 = arith.constant 1.000000e+00 : f32
    %126 = vector.broadcast %cst_77 : f32 to vector<2x32xf32>
    %127 = arith.addf %126, %125 : vector<2x32xf32>
    %128 = arith.divf %126, %127 : vector<2x32xf32>
    %129 = vector.extract_strided_slice %116 {offsets = [0, 64], sizes = [2, 32], strides = [1, 1]} : vector<2x128xf32> to vector<2x32xf32>
    %130 = vector.extract_strided_slice %116 {offsets = [0, 96], sizes = [2, 32], strides = [1, 1]} : vector<2x128xf32> to vector<2x32xf32>
    %131 = arith.mulf %122, %130 : vector<2x32xf32>
    %132 = arith.addf %129, %131 : vector<2x32xf32>
    %133 = math.tanh %132 : vector<2x32xf32>
    %cst_78 = arith.constant 1.000000e+00 : f32
    %134 = vector.broadcast %cst_78 : f32 to vector<2x32xf32>
    %135 = arith.subf %134, %128 : vector<2x32xf32>
    %136 = arith.mulf %135, %133 : vector<2x32xf32>
    %137 = arith.mulf %128, %99 : vector<2x32xf32>
    %138 = arith.addf %136, %137 : vector<2x32xf32>
    %c2_79 = arith.constant 2 : index
    %c0_80 = arith.constant 0 : index
    %c0_81 = arith.constant 0 : index
    %139 = vector.load %arg6[%c2_79, %c0_80, %c0_81] : memref<3x32x128xf32, #tpu.memory_space<vmem>>, vector<1x32x128xf32>
    %140 = vector.shape_cast %139 : vector<1x32x128xf32> to vector<32x128xf32>
    %cst_82 = arith.constant dense<0.000000e+00> : vector<2x128xf32>
    %141 = tpu.matmul %138, %140, %cst_82 {dimension_numbers = #tpu.dot_dimension_numbers<[1], [0], [0], [1], [0, 0, 1, 1], [], []>} : vector<2x32xf32>, vector<32x128xf32>, vector<2x128xf32> -> vector<2x128xf32>
    %c2_83 = arith.constant 2 : index
    %c0_84 = arith.constant 0 : index
    %c0_85 = arith.constant 0 : index
    %142 = vector.load %arg7[%c2_83, %c0_84, %c0_85] : memref<3x1x128xf32, #tpu.memory_space<vmem>>, vector<1x1x128xf32>
    %143 = vector.shape_cast %142 : vector<1x1x128xf32> to vector<1x128xf32>
    %144 = vector.broadcast %143 : vector<1x128xf32> to vector<2x128xf32>
    %145 = arith.addf %141, %144 : vector<2x128xf32>
    %c6_86 = arith.constant 6 : index
    %c0_87 = arith.constant 0 : index
    %146 = vector.load %arg8[%c6_86, %c0_87] : memref<8x128xf32, #tpu.memory_space<vmem>>, vector<2x128xf32>
    tpu.vector_store %arg8[%c6_86, %c0_87], %145 {strides = array<i32>} : memref<8x128xf32, #tpu.memory_space<vmem>>, vector<2x128xf32>,
    return
  }
}

</mosaic_0001>

<bundles_post_ra>
// kernel: fwd.1
= control target key start
LH: loop header
LB: loop body
LE: loop exit
PB: predicated region body
PF: predicated region fallthrough
CT: control target
= control target key end

     0   :  { %13 = vsyncpa [#allocation3], 0  ;;  %s1497_s0 = inlined_call_operand.vmem [shape: f32[8,16], index: 0, kind: input, shape index: {}]   ;;  %s1498_s1 = inlined_call_operand.vmem [shape: f32[8,32], index: 1, kind: input, shape index: {}]   ;;  %s1499_s2 = inlined_call_operand.vmem [shape: f32[3,16,32], index: 2, kind: input, shape index: {}]   ;;  %s1500_s3 = inlined_call_operand.vmem [shape: f32[3,1,32], index: 3, kind: input, shape index: {}]   ;;  %s1501_s4 = inlined_call_operand.hbm [shape: f32[3,64,128], index: 4, kind: input, shape index: {}]   ;;  %s1502_s5 = inlined_call_operand.vmem [shape: f32[3,1,128], index: 5, kind: input, shape index: {}]   ;;  %s1503_s6 = inlined_call_operand.hbm [shape: f32[3,32,128], index: 6, kind: input, shape index: {}]   ;;  %s1504_s7 = inlined_call_operand.vmem [shape: f32[3,1,128], index: 7, kind: input, shape index: {}]   ;;  %s1505_s8 = inlined_call_operand.vmem [shape: f32[8,128], index: 8, kind: output, shape index: {}]  }
   0x1   :  { %14 = vsyncpa [#allocation5], 0  ;;  %s1280_s27 = smov [#allocation2]   ;;  %s1232_s9 = scalar_lea.hbm %s1501_s4, 3072 }
   0x2   :  { %s28_s28 = sshll.u32 %s1280_s27, 4  ;;  %p1233_p0 = scmp.ne.s32.totalorder %s1501_s4, %s1232_s9  ;;  %s29_s28 = int_to_ptr.vmem [resolvable:$true] %s28_s28 }
   0x3   :  { %p1236_p1 = scmp.lt.u32.totalorder %s1232_s9, %s1501_s4 }
   0x5   :  { %p1238_p2 = pnand %p1236_p1, %p1233_p0 }
   0x7   :  { %1241 = shalt.err (!%p1238_p2)
}
   0x8   :  { %s1242_s14 = scalar_lea.vmem %s29_s28, 3072  ;;  %p1247_p4 = scmp.lt.s32.totalorder %s29_s28, %s29_s28 }
   0x9   :  { %p1243_p3 = scmp.ne.s32.totalorder %s29_s28, %s1242_s14  ;;  %p1248_p5 = scmp.lt.s32.totalorder %s1242_s14, %s1242_s14 }
   0xb   :  { %p1249_p6 = por %p1248_p5, %p1247_p4 }
   0xd   :  { %p1250_p7 = pnand %p1249_p6, %p1243_p3 }
   0xf   :  { %1253 = shalt.err (!%p1250_p7)
}
  0x10   :  { %s1281_s15 = smov 128   ;;  %s1282_s16 = smov 8  }
  0x11   :  { %34 = dma.hbm_to_vmem [thread:$0]  %s1501_s4, 3072, %s29_s28, [#allocation3], %s1281_s15, %s1281_s15, %s1282_s16  }
  0x12   :  { %s1283_s19 = smov [#allocation4]   ;;  %s1254_s23 = scalar_lea.hbm %s1503_s6, 1536 }
  0x13   :  { %s42_s20 = sshll.u32 %s1283_s19, 4  ;;  %p1255_p8 = scmp.ne.s32.totalorder %s1503_s6, %s1254_s23  ;;  %s43_s20 = int_to_ptr.vmem [resolvable:$true] %s42_s20 }
  0x14   :  { %p1258_p9 = scmp.lt.u32.totalorder %s1254_s23, %s1503_s6 }
  0x16   :  { %p1260_p10 = pnand %p1258_p9, %p1255_p8 }
  0x18   :  { %1263 = shalt.err (!%p1260_p10)
}
  0x19   :  { %s1264_s29 = scalar_lea.vmem %s43_s20, 1536  ;;  %p1269_p12 = scmp.lt.s32.totalorder %s43_s20, %s43_s20 }
  0x1a   :  { %p1265_p11 = scmp.ne.s32.totalorder %s43_s20, %s1264_s29  ;;  %p1270_p13 = scmp.lt.s32.totalorder %s1264_s29, %s1264_s29 }
  0x1c   :  { %p1271_p0 = por %p1270_p13, %p1269_p12 }
  0x1e   :  { %p1272_p1 = pnand %p1271_p0, %p1265_p11 }
  0x20   :  { %1275 = shalt.err (!%p1272_p1)
}
  0x21   :  { %48 = dma.hbm_to_vmem [thread:$0]  %s1503_s6, 1536, %s43_s20, [#allocation5], %s1281_s15, %s1281_s15, %s1282_s16  }
  0x22   :  { %1276 = dma.done.wait [#allocation3], 3072  }
  0x23   :  { %1277 = vsyncadd [#allocation3], 4294964224 }
  0x24   :  { %1278 = dma.done.wait [#allocation5], 1536  }
  0x25   :  { %1279 = vsyncadd [#allocation5], 4294965760  ;;  %v1284_v0 = vmov 0.0|0.0   ;;  %vm1285_vm0 = vmmov 0   ;;  %v1286_v1 = vmov 0.0   ;;  %v59_v2 = vld [vmem:[%s1499_s2] sm:$0xff] }
  0x26   :  { %1141 = vmatprep.subr.bf16.mxu0 %v1284_v0  ;;  %1034 = vmatprep.mubr.msk.f32.mxu0 %vm1285_vm0, %v1286_v1  ;;  %v60_v3 = vld [vmem:[%s1499_s2 + $0x8] sm:$0xff]  ;;  %v58_v5 = vld [vmem:[%s1498_s1] sm:$0x3]  ;;  %s1287_s13 = smov 32   ;;  %v151_v9 = vld [vmem:[#allocation2 + $0x10] sm:$0xff]  ;;  %vm68_vm1 = vcmask 130048  }
  0x27   :  { %1144 = vmatprep.subr.bf16.mxu1 %v1284_v0  ;;  %1053 = vmatprep.mubr.msk.f32.mxu1 %vm1285_vm0, %v1286_v1  ;;  %v1142_v4 = vpack.c.bf16 %v60_v3, %v59_v2  ;;  %v149_v6 = vld [vmem:[#allocation2] sm:$0xff]  ;;  %v150_v7 = vld [vmem:[#allocation2 + $0x8] sm:$0xff]  ;;  %v152_v10 = vld [vmem:[#allocation2 + $0x18] sm:$0xff]  ;;  %vm147_vm2 = vcmask 261120   ;;  %vm164_vm3 = vcmask 523264   ;;  %s1288_s20 = smov 64  }
  0x28   :  { %144 = vrot.lane.b32.xlu0 %v58_v5, %s1287_s13  ;;  %v1145_v8 = vpack.c.bf16 %v150_v7, %v149_v6  ;;  %v57_v11 = vld [vmem:[%s1497_s0] sm:$0x3]  ;;  %v1148_v12 = vpack.c.bf16 %v152_v10, %v151_v9  ;;  %v154_v14 = vld [vmem:[#allocation2 + $0x28] sm:$0xff]  ;;  %v155_v16 = vld [vmem:[#allocation2 + $0x30] sm:$0xff]  ;;  %s1289_s21 = smov 96  }
  0x29   :  { %1143 = vmatpush3.bf16.msra.mxu0 %v1142_v4  ;;  %v153_v13 = vld [vmem:[#allocation2 + $0x20] sm:$0xff]  ;;  %v156_v17 = vld [vmem:[#allocation2 + $0x38] sm:$0xff]  ;;  %v264_v39 = vld [vmem:[#allocation4 + $0x8] sm:$0xff] }
  0x2a   :  { %1146 = vmatpush3.bf16.msra.mxu1 %v1145_v8  ;;  %1156 = vmatprep.subr.bf16.mxu0 %v1284_v0  ;;  %v1151_v15 = vpack.c.bf16 %v154_v14, %v153_v13  ;;  %v1154_v18 = vpack.c.bf16 %v156_v17, %v155_v16  ;;  %v948_v19 = vld [vmem:[%s1500_s3] ss:$0 sm:$0xff]  ;;  %v265_v40 = vld [vmem:[#allocation4 + $0x10] sm:$0xff]  ;;  %v266_v42 = vld [vmem:[#allocation4 + $0x18] sm:$0xff] }
  0x2b   :  { %1147 = vmatprep.subr.bf16.mxu1 %v1284_v0  ;;  %v950_v26 = vld [vmem:[%s1502_s5] ss:$0 sm:$0xff]  ;;  %v1160_v43 = vpack.c.bf16 %v266_v42, %v265_v40  ;;  %v351_v45 = vld [vmem:[%s1498_s1 + $0x2] sm:$0xf]  ;;  %v955_v51 = vld [vmem:[%s1499_s2 + $0x10] sm:$0xff] }
  0x2c   :  { %1035 = vmatmul.mubr.msk.f32.vlgmr.msra.gmra.mrb[0].mxu0 %vm68_vm1, %v57_v11  ;;  %v263_v38 = vld [vmem:[#allocation4] sm:$0xff]  ;;  %v956_v52 = vld [vmem:[%s1499_s2 + $0x18] sm:$0xff]  ;;  %v444_v55 = vld [vmem:[#allocation2 + $0x48] sm:$0xff] }
  0x2d   :  { %1064 = vmatprep.mubr.msk.f32.mxu0 %vm1285_vm0, %v1286_v1  ;;  %v1157_v41 = vpack.c.bf16 %v264_v39, %v263_v38  ;;  %v1163_v53 = vpack.c.bf16 %v956_v52, %v955_v51  ;;  %v443_v54 = vld [vmem:[#allocation2 + $0x40] sm:$0xff]  ;;  %v445_v59 = vld [vmem:[#allocation2 + $0x50] sm:$0xff]  ;;  %v446_v60 = vld [vmem:[#allocation2 + $0x58] sm:$0xff] }
  0x2e   :  { %1149 = vmatpush3.bf16.msra.mxu1 %v1148_v12  ;;  %v350_v57 = vld [vmem:[%s1497_s0 + $0x2] sm:$0xf]  ;;  %v1166_v58 = vpack.c.bf16 %v444_v55, %v443_v54  ;;  %v1169_v61 = vpack.c.bf16 %v446_v60, %v445_v59  ;;  %v448_v63 = vld [vmem:[#allocation2 + $0x68] sm:$0xff]  ;;  %v449_v3 = vld [vmem:[#allocation2 + $0x70] sm:$0xff] }
  0x2f   :  { %1150 = vmatprep.subr.bf16.mxu1 %v1284_v0  ;;  %1158 = vmatpush3.bf16.msra.mxu0 %v1157_v41  ;;  %v447_v62 = vld [vmem:[#allocation2 + $0x60] sm:$0xff]  ;;  %v450_v4 = vld [vmem:[#allocation2 + $0x78] sm:$0xff]  ;;  %v744_v54 = vld [vmem:[#allocation2 + $0xa8] sm:$0xff] }
  0x30   :  { %1159 = vmatprep.subr.bf16.mxu0 %v1284_v0  ;;  %v1172_v2 = vpack.c.bf16 %v448_v63, %v447_v62  ;;  %v1175_v5 = vpack.c.bf16 %v450_v4, %v449_v3  ;;  %v953_v6 = vld [vmem:[%s1504_s7] ss:$0 sm:$0xff]  ;;  %v958_v10 = vld [vmem:[%s1500_s3 + $0x1] ss:$0 sm:$0xff]  ;;  %v742_v51 = vld [vmem:[#allocation2 + $0x98] sm:$0xff] }
  0x31   :  { %v961_v17 = vld [vmem:[%s1502_s5 + $0x1] ss:$0 sm:$0xff]  ;;  %v970_v62 = vld [vmem:[%s1500_s3 + $0x2] ss:$0 sm:$0xff] }
  0x32   :  { %1152 = vmatpush3.bf16.msra.mxu1 %v1151_v15  ;;  %v967_v42 = vld [vmem:[%s1499_s2 + $0x20] sm:$0xff] }
  0x33   :  { %1153 = vmatprep.subr.bf16.mxu1 %v1284_v0  ;;  %1161 = vmatpush3.bf16.msra.mxu0 %v1160_v43  ;;  %v968_v43 = vld [vmem:[%s1499_s2 + $0x28] sm:$0xff]  ;;  %v965_v59 = vld [vmem:[%s1504_s7 + $0x1] ss:$0 sm:$0xff] }
  0x34   :  { %1162 = vmatprep.subr.bf16.mxu0 %v1284_v0 }
  0x36   :  { %1155 = vmatpush3.bf16.msra.mxu1 %v1154_v18 }
  0x37   :  { %1177 = vmatprep.subr.bf16.mxu1 %v1284_v0 }
  0x9a   :  { %v145_v23 = vpop.permute.xlu0 %144 }
  0xff   :  { %v138_v20 = vpop.f32.mrb[0].mxu0 }
 0x100   :  { %v139_v21 = vadd.f32 %v948_v19, %v138_v20  ;;  %v1036_v22 = vpop.f32.mrb[1].mxu0 }
 0x102   :  { %v142_v24 = vmax.f32 %v139_v21, 0.0 }
 0x104   :  { %v148_v25 = vsel %vm147_vm2, %v142_v24, %v145_v23 }
 0x105   :  { %1054 = vmatmul.mubr.msk.f32.vlgmr.msra.gmra.mrb[0].mxu1 %vm164_vm3, %v148_v25 }
 0x106   :  { %1101 = vmatprep.mubr.msk.f32.mxu1 %vm1285_vm0, %v1286_v1 }
 0x1d8   :  { %v234_v27 = vpop.f32.mrb[0].mxu1 }
 0x1d9   :  { %v235_v28 = vadd.f32 %v950_v26, %v234_v27  ;;  %v1055_v29 = vpop.f32.mrb[1].mxu1 }
 0x1da   :  { %v558_v29 = vld [vmem:[#allocation4 + $0x20] sm:$0xff] }
 0x1db   :  { %245 = vrot.lane.b32.xlu0 %v235_v28, %s1287_s13  ;;  %v952_v30 = vmul.f32 -1.442695, %v235_v28 }
 0x1dd   :  { %1214 = vpow2.f32 %v952_v30  ;;  %v559_v30 = vld [vmem:[#allocation4 + $0x28] sm:$0xff] }
 0x1e7   :  { %v1215_v31 = vpop.eup %1214 }
 0x1e8   :  { %v241_v32 = vadd.f32 1.0, %v1215_v31  ;;  %v560_v31 = vld [vmem:[#allocation4 + $0x30] sm:$0xff] }
 0x1ea   :  { %1216 = vrcp.f32 %v241_v32  ;;  %v1178_v32 = vpack.c.bf16 %v559_v30, %v558_v29 }
 0x1ec   :  { %1179 = vmatpush3.bf16.msra.mxu1 %v1178_v32  ;;  %v977_v32 = vld [vmem:[%s1504_s7 + $0x2] ss:$0 sm:$0xff] }
 0x1ed   :  { %1180 = vmatprep.subr.bf16.mxu1 %v1284_v0 }
 0x1f4   :  { %v1217_v33 = vpop.eup %1216 }
 0x1f5   :  { %v255_v46 = vsub.f32 1.0, %v1217_v33  ;;  %v261_v48 = vmul.f32 %v1217_v33, %v145_v23 }
 0x24d   :  { %v246_v34 = vpop.permute.xlu0 %245 }
 0x24e   :  { %v248_v35 = vmul.f32 %v1217_v33, %v246_v34  ;;  %v561_v33 = vld [vmem:[#allocation4 + $0x38] sm:$0xff] }
 0x24f   :  { %v1181_v34 = vpack.c.bf16 %v561_v33, %v560_v31 }
 0x250   :  { %250 = vrot.lane.b32.xlu1 %v248_v35, %s1288_s20 }
 0x251   :  { %1182 = vmatpush3.bf16.msra.mxu1 %v1181_v34 }
 0x252   :  { %1183 = vmatprep.subr.bf16.mxu1 %v1284_v0 }
 0x2c2   :  { %v251_v36 = vpop.permute.xlu1 %250 }
 0x2c3   :  { %v253_v37 = vadd.f32 %v251_v36, %v235_v28  ;;  %v647_v36 = vld [vmem:[%s1498_s1 + $0x6] sm:$0x3] }
 0x2c5   :  { %1218 = vtanh.f32 %v253_v37 }
 0x2cf   :  { %v1219_v44 = vpop.eup %1218 }
 0x2d0   :  { %257 = vrot.lane.b32.xlu1 %v1219_v44, %s1289_s21  ;;  %v1184_v44 = vpack.c.bf16 %v968_v43, %v967_v42 }
 0x2d4   :  { %438 = vrot.lane.b32.xlu1 %v351_v45, %s1287_s13  ;;  %v739_v45 = vld [vmem:[#allocation2 + $0x80] sm:$0xff] }
 0x342   :  { %v258_v47 = vpop.permute.xlu1 %257 }
 0x343   :  { %v260_v49 = vmul.f32 %v258_v47, %v255_v46  ;;  %v740_v46 = vld [vmem:[#allocation2 + $0x88] sm:$0xff] }
 0x345   :  { %v262_v50 = vadd.f32 %v261_v48, %v260_v49  ;;  %v646_v48 = vld [vmem:[%s1497_s0 + $0x6] sm:$0x3]  ;;  %v1187_v49 = vpack.c.bf16 %v740_v46, %v739_v45 }
 0x346   :  { %v439_v14 = vpop.permute.xlu1 %438 }
 0x347   :  { %275 = vrot.lane.b32.xlu0 %v262_v50, %s1289_s21  ;;  %v741_v50 = vld [vmem:[#allocation2 + $0x90] sm:$0xff] }
 0x348   :  { %v1190_v52 = vpack.c.bf16 %v742_v51, %v741_v50 }
 0x3b9   :  { %v276_v56 = vpop.permute.xlu0 %275 }
 0x3ba   :  { %1065 = vmatmul.mubr.msk.f32.vlgmr.msra.gmra.mrb[2].mxu0 %vm147_vm2, %v276_v56  ;;  %v745_v56 = vld [vmem:[#allocation2 + $0xb0] sm:$0xff] }
 0x3bb   :  { %1164 = vmatpush3.bf16.msra.mxu0 %v1163_v53  ;;  %1071 = vmatprep.mubr.msk.f32.mxu0 %vm1285_vm0, %v1286_v1  ;;  %v743_v53 = vld [vmem:[#allocation2 + $0xa0] sm:$0xff] }
 0x3bc   :  { %1165 = vmatprep.subr.bf16.mxu0 %v1284_v0  ;;  %v1193_v55 = vpack.c.bf16 %v744_v54, %v743_v53 }
 0x3be   :  { %1072 = vmatmul.mubr.msk.f32.vlgmr.msra.gmra.mrb[4].mxu0 %vm68_vm1, %v350_v57  ;;  %v746_v57 = vld [vmem:[#allocation2 + $0xb8] sm:$0xff] }
 0x3bf   :  { %1167 = vmatpush3.bf16.msra.mxu0 %v1166_v58  ;;  %1090 = vmatprep.mubr.msk.f32.mxu0 %vm1285_vm0, %v1286_v1  ;;  %v1196_v58 = vpack.c.bf16 %v746_v57, %v745_v56 }
 0x3c0   :  { %1168 = vmatprep.subr.bf16.mxu0 %v1284_v0 }
 0x3c3   :  { %1170 = vmatpush3.bf16.msra.mxu0 %v1169_v61 }
 0x3c4   :  { %1171 = vmatprep.subr.bf16.mxu0 %v1284_v0 }
 0x3c7   :  { %1173 = vmatpush3.bf16.msra.mxu0 %v1172_v2 }
 0x3c8   :  { %1174 = vmatprep.subr.bf16.mxu0 %v1284_v0 }
 0x3cb   :  { %1176 = vmatpush3.bf16.msra.mxu0 %v1175_v5 }
 0x3cc   :  { %1198 = vmatprep.subr.bf16.mxu0 %v1284_v0 }
 0x48d   :  { %v345_v7 = vpop.f32.mrb[2].mxu0 }
 0x48e   :  { %v346_v8 = vadd.f32 %v953_v6, %v345_v7  ;;  %v1066_v9 = vpop.f32.mrb[3].mxu0  ;;  %v973_v7 = vld [vmem:[%s1502_s5 + $0x2] ss:$0 sm:$0xff] }
 0x490   :  { %349 = vst [vmem:[%s1505_s8] sm:$0x3] %v346_v8 }
 0x491   :  { %v432_v11 = vpop.f32.mrb[4].mxu0 }
 0x492   :  { %v433_v12 = vadd.f32 %v958_v10, %v432_v11  ;;  %v1073_v13 = vpop.f32.mrb[5].mxu0 }
 0x494   :  { %v436_v15 = vmax.f32 %v433_v12, 0.0 }
 0x496   :  { %v441_v16 = vsel %vm147_vm2, %v436_v15, %v439_v14 }
 0x497   :  { %1091 = vmatmul.mubr.msk.f32.vlgmr.msra.gmra.mrb[6].mxu0 %vm164_vm3, %v441_v16 }
 0x498   :  { %1138 = vmatprep.mubr.msk.f32.mxu0 %vm1285_vm0, %v1286_v1 }
 0x56a   :  { %v528_v18 = vpop.f32.mrb[6].mxu0 }
 0x56b   :  { %v529_v19 = vadd.f32 %v961_v17, %v528_v18  ;;  %v1092_v20 = vpop.f32.mrb[7].mxu0 }
 0x56c   :  { %v855_v20 = vld [vmem:[#allocation4 + $0x48] sm:$0xff] }
 0x56d   :  { %539 = vrot.lane.b32.xlu0 %v529_v19, %s1287_s13  ;;  %v963_v21 = vmul.f32 -1.442695, %v529_v19 }
 0x56f   :  { %1220 = vpow2.f32 %v963_v21  ;;  %v856_v21 = vld [vmem:[#allocation4 + $0x50] sm:$0xff] }
 0x579   :  { %v1221_v22 = vpop.eup %1220 }
 0x57a   :  { %v535_v23 = vadd.f32 1.0, %v1221_v22 }
 0x57c   :  { %1222 = vrcp.f32 %v535_v23  ;;  %v857_v23 = vld [vmem:[#allocation4 + $0x58] sm:$0xff] }
 0x586   :  { %v1223_v24 = vpop.eup %1222 }
 0x587   :  { %v549_v37 = vsub.f32 1.0, %v1223_v24  ;;  %v555_v39 = vmul.f32 %v1223_v24, %v439_v14 }
 0x5df   :  { %v540_v25 = vpop.permute.xlu0 %539 }
 0x5e0   :  { %v542_v26 = vmul.f32 %v1223_v24, %v540_v25  ;;  %v1202_v24 = vpack.c.bf16 %v857_v23, %v856_v21 }
 0x5e2   :  { %544 = vrot.lane.b32.xlu1 %v542_v26, %s1288_s20 }
 0x654   :  { %v545_v27 = vpop.permute.xlu1 %544 }
 0x655   :  { %v547_v28 = vadd.f32 %v545_v27, %v529_v19  ;;  %v854_v19 = vld [vmem:[#allocation4 + $0x40] sm:$0xff] }
 0x656   :  { %v1199_v22 = vpack.c.bf16 %v855_v20, %v854_v19 }
 0x657   :  { %1224 = vtanh.f32 %v547_v28 }
 0x658   :  { %1200 = vmatpush3.bf16.msra.mxu0 %v1199_v22 }
 0x659   :  { %1201 = vmatprep.subr.bf16.mxu0 %v1284_v0 }
 0x65c   :  { %1203 = vmatpush3.bf16.msra.mxu0 %v1202_v24 }
 0x661   :  { %v1225_v35 = vpop.eup %1224 }
 0x662   :  { %551 = vrot.lane.b32.xlu0 %v1225_v35, %s1289_s21 }
 0x666   :  { %734 = vrot.lane.b32.xlu0 %v647_v36, %s1287_s13 }
 0x6d4   :  { %v552_v38 = vpop.permute.xlu0 %551 }
 0x6d5   :  { %v554_v40 = vmul.f32 %v552_v38, %v549_v37 }
 0x6d7   :  { %v556_v41 = vadd.f32 %v555_v39, %v554_v40 }
 0x6d8   :  { %v735_v4 = vpop.permute.xlu0 %734 }
 0x6d9   :  { %571 = vrot.lane.b32.xlu1 %v556_v41, %s1289_s21 }
 0x74b   :  { %v572_v47 = vpop.permute.xlu1 %571 }
 0x74c   :  { %1102 = vmatmul.mubr.msk.f32.vlgmr.msra.gmra.mrb[2].mxu1 %vm147_vm2, %v572_v47 }
 0x74d   :  { %1185 = vmatpush3.bf16.msra.mxu1 %v1184_v44  ;;  %1108 = vmatprep.mubr.msk.f32.mxu1 %vm1285_vm0, %v1286_v1 }
 0x74e   :  { %1186 = vmatprep.subr.bf16.mxu1 %v1284_v0 }
 0x750   :  { %1109 = vmatmul.mubr.msk.f32.vlgmr.msra.gmra.mrb[4].mxu1 %vm68_vm1, %v646_v48 }
 0x751   :  { %1188 = vmatpush3.bf16.msra.mxu1 %v1187_v49  ;;  %1127 = vmatprep.mubr.msk.f32.mxu1 %vm1285_vm0, %v1286_v1 }
 0x752   :  { %1189 = vmatprep.subr.bf16.mxu1 %v1284_v0 }
 0x755   :  { %1191 = vmatpush3.bf16.msra.mxu1 %v1190_v52 }
 0x756   :  { %1192 = vmatprep.subr.bf16.mxu1 %v1284_v0 }
 0x759   :  { %1194 = vmatpush3.bf16.msra.mxu1 %v1193_v55 }
 0x75a   :  { %1195 = vmatprep.subr.bf16.mxu1 %v1284_v0 }
 0x75d   :  { %1197 = vmatpush3.bf16.msra.mxu1 %v1196_v58 }
 0x81f   :  { %v641_v1 = vpop.f32.mrb[2].mxu1 }
 0x820   :  { %v642_v60 = vadd.f32 %v965_v59, %v641_v1  ;;  %v1103_v61 = vpop.f32.mrb[3].mxu1 }
 0x822   :  { %645 = vst [vmem:[%s1505_s8 + $0x2] sm:$0xf] %v642_v60 }
 0x823   :  { %v728_v63 = vpop.f32.mrb[4].mxu1 }
 0x824   :  { %v729_v2 = vadd.f32 %v970_v62, %v728_v63  ;;  %v1110_v3 = vpop.f32.mrb[5].mxu1 }
 0x826   :  { %v732_v5 = vmax.f32 %v729_v2, 0.0 }
 0x828   :  { %v737_v6 = vsel %vm147_vm2, %v732_v5, %v735_v4 }
 0x829   :  { %1128 = vmatmul.mubr.msk.f32.vlgmr.msra.gmra.mrb[6].mxu1 %vm164_vm3, %v737_v6 }
 0x8fc   :  { %v824_v8 = vpop.f32.mrb[6].mxu1 }
 0x8fd   :  { %v825_v9 = vadd.f32 %v973_v7, %v824_v8  ;;  %v1129_v10 = vpop.f32.mrb[7].mxu1 }
 0x8ff   :  { %835 = vrot.lane.b32.xlu1 %v825_v9, %s1287_s13  ;;  %v975_v11 = vmul.f32 -1.442695, %v825_v9 }
 0x901   :  { %1226 = vpow2.f32 %v975_v11 }
 0x90b   :  { %v1227_v12 = vpop.eup %1226 }
 0x90c   :  { %v831_v13 = vadd.f32 1.0, %v1227_v12 }
 0x90e   :  { %1228 = vrcp.f32 %v831_v13 }
 0x918   :  { %v1229_v14 = vpop.eup %1228 }
 0x919   :  { %v845_v26 = vsub.f32 1.0, %v1229_v14  ;;  %v851_v28 = vmul.f32 %v1229_v14, %v735_v4 }
 0x971   :  { %v836_v15 = vpop.permute.xlu1 %835 }
 0x972   :  { %v838_v16 = vmul.f32 %v1229_v14, %v836_v15 }
 0x974   :  { %840 = vrot.lane.b32.xlu0 %v838_v16, %s1288_s20 }
 0x9e6   :  { %v841_v17 = vpop.permute.xlu0 %840 }
 0x9e7   :  { %v843_v18 = vadd.f32 %v841_v17, %v825_v9 }
 0x9e9   :  { %1230 = vtanh.f32 %v843_v18 }
 0x9f3   :  { %v1231_v25 = vpop.eup %1230 }
 0x9f4   :  { %847 = vrot.lane.b32.xlu1 %v1231_v25, %s1289_s21 }
 0xa66   :  { %v848_v27 = vpop.permute.xlu1 %847 }
 0xa67   :  { %v850_v29 = vmul.f32 %v848_v27, %v845_v26 }
 0xa69   :  { %v852_v30 = vadd.f32 %v851_v28, %v850_v29 }
 0xa6b   :  { %867 = vrot.lane.b32.xlu0 %v852_v30, %s1289_s21 }
 0xadd   :  { %v868_v31 = vpop.permute.xlu0 %867 }
 0xade   :  { %1139 = vmatmul.mubr.msk.f32.vlgmr.msra.gmra.mrb[8].mxu0 %vm147_vm2, %v868_v31 }
 0xbb1   :  { %v937_v33 = vpop.f32.mrb[8].mxu0 }
 0xbb2   :  { %v938_v0 = vadd.f32 %v977_v32, %v937_v33  ;;  %v1140_v34 = vpop.f32.mrb[9].mxu0 }
 0xbb4   :  { %941 = vst [vmem:[%s1505_s8 + $0x6] sm:$0x3] %v938_v0 }
 0xbb5   :  { %946 = vsyncpa [#allocation3], 1 }
 0xbb6   :  { %947 = vsyncpa [#allocation5], 1 }

</bundles_post_ra>
